<compile_context>
chip_gen: v6e
topology: v6e:2x2x1
jax: 0.10.0
libtpu: 0.0.40
codegen_flags: <defaults>
</compile_context>

<pallas_src>
import math

import jax
import jax.numpy as jnp
from jax.experimental import pallas as pl
from jax.experimental.pallas import tpu as pltpu

LANE = 128


def _ssp(x):
    # shifted softplus: log(0.5*exp(x) + 0.5) = softplus(x) - log(2)
    return jnp.logaddexp(x, 0.0) - jnp.log(2.0)


def _round_up(x, m):
    return (x + m - 1) // m * m


def _pad2d(x, rows, cols):
    r, c = x.shape
    return jnp.pad(x, ((0, rows - r), (0, cols - c)))


def _pad_bias(b, cols):
    return jnp.pad(b, (0, cols - b.shape[0]))[None, :]


# --------------------------------------------------------------------------
# Kernel 1 (fused per-edge pass, tiled over E):
#   e' = ssp(x @ W1 + b1) @ W2 + b2           (EdgeUpdate)
#   he = ssp(e' @ We1 + be1) @ We2 + be2      (EUCFConv.project_edge)
# x = cat(h_src, h_dst, rbf) is built (and lane-padded) in the wrapper.
# --------------------------------------------------------------------------
def edge_kernel(x_ref, w1_ref, b1_ref, w2_ref, b2_ref,
                we1_ref, be1_ref, we2_ref, be2_ref,
                e_out_ref, he_out_ref):
    x = x_ref[...]
    h1 = _ssp(jnp.dot(x, w1_ref[...], preferred_element_type=jnp.float32)
              + b1_ref[...])
    e = jnp.dot(h1, w2_ref[...], preferred_element_type=jnp.float32) + b2_ref[...]
    e_out_ref[...] = e.astype(e_out_ref.dtype)

    h2 = _ssp(jnp.dot(e, we1_ref[...], preferred_element_type=jnp.float32)
              + be1_ref[...])
    he = jnp.dot(h2, we2_ref[...], preferred_element_type=jnp.float32) + be2_ref[...]
    he_out_ref[...] = he.astype(he_out_ref.dtype)


# --------------------------------------------------------------------------
# Kernel 2 (per-node pass, tiled over N):
#   nn = ssp(agg @ Wn1 + bn1) @ Wn2 + bn2 ;  node_out = node + nn  (fused residual)
# --------------------------------------------------------------------------
def node_kernel(node_ref, agg_ref, wn1_ref, bn1_ref, wn2_ref, bn2_ref, out_ref):
    h = _ssp(jnp.dot(agg_ref[...], wn1_ref[...], preferred_element_type=jnp.float32)
             + bn1_ref[...])
    nn_ = jnp.dot(h, wn2_ref[...], preferred_element_type=jnp.float32) + bn2_ref[...]
    out_ref[...] = (node_ref[...] + nn_).astype(out_ref.dtype)


def nmpeu_interaction(node_feats, edge_feats, src, dst, params,
                      *, edge_tile=512, node_tile=256):
    """node_feats: [N, D] f32, edge_feats: [E, R] f32, src/dst: [E] int32."""
    N, D = node_feats.shape
    E, R = edge_feats.shape
    H = 2 * D            # EdgeUpdate hidden width
    C = 2 * D + R        # concatenated edge-input width

    # lane-pad every feature dim to a multiple of 128 (zeros are exact no-ops)
    Cp, Hp, Rp, Dp = (_round_up(v, LANE) for v in (C, H, R, D))

    TE = min(edge_tile, _round_up(E, 8))
    E_pad = _round_up(E, TE)
    TN = min(node_tile, _round_up(N, 8))
    N_pad = _round_up(N, TN)

    # -------- wrapper glue: gather endpoints, concat, pad --------
    # TODO(synk): for very large graphs, gather h_src/h_dst in-kernel via
    # scalar-prefetched src/dst indices instead of materializing them here.
    x = jnp.concatenate([node_feats[src], node_feats[dst], edge_feats], axis=-1)
    x = _pad2d(x, E_pad, Cp)                                   # [E_pad, Cp]

    w1 = _pad2d(params["eu_w1"], Cp, Hp); b1 = _pad_bias(params["eu_b1"], Hp)
    w2 = _pad2d(params["eu_w2"], Hp, Rp); b2 = _pad_bias(params["eu_b2"], Rp)
    we1 = _pad2d(params["ce_w1"], Rp, Dp); be1 = _pad_bias(params["ce_b1"], Dp)
    we2 = _pad2d(params["ce_w2"], Dp, Dp); be2 = _pad_bias(params["ce_b2"], Dp)
    wn1 = _pad2d(params["cn_w1"], Dp, Dp); bn1 = _pad_bias(params["cn_b1"], Dp)
    wn2 = _pad2d(params["cn_w2"], Dp, Dp); bn2 = _pad_bias(params["cn_b2"], Dp)

    def w_spec(shape):
        return pl.BlockSpec(shape, lambda i: (0, 0))           # VMEM-resident

    # -------- Pallas call 1: fused per-edge MLPs, tiled over E --------
    edge_w_bytes = 4 * (Cp * Hp + Hp * Rp + Rp * Dp + Dp * Dp + Hp + Rp + 2 * Dp)
    edge_io_bytes = 4 * TE * (Cp + Rp + Dp)
    edge_vmem = 2 * edge_io_bytes + 2 * edge_w_bytes + (4 << 20)
    edge_flops = 2 * E_pad * (Cp * Hp + Hp * Rp + Rp * Dp + Dp * Dp)
    edge_cost = pl.CostEstimate(
        flops=edge_flops,
        transcendentals=E_pad * (Hp + Dp),
        bytes_accessed=4 * E_pad * (Cp + Rp + Dp) + edge_w_bytes)

    edge_pad, he_pad = pl.pallas_call(
        edge_kernel,
        out_shape=(jax.ShapeDtypeStruct((E_pad, Rp), jnp.float32),
                   jax.ShapeDtypeStruct((E_pad, Dp), jnp.float32)),
        grid=(E_pad // TE,),
        in_specs=[pl.BlockSpec((TE, Cp), lambda i: (i, 0)),
                  w_spec((Cp, Hp)), w_spec((1, Hp)),
                  w_spec((Hp, Rp)), w_spec((1, Rp)),
                  w_spec((Rp, Dp)), w_spec((1, Dp)),
                  w_spec((Dp, Dp)), w_spec((1, Dp))],
        out_specs=(pl.BlockSpec((TE, Rp), lambda i: (i, 0)),
                   pl.BlockSpec((TE, Dp), lambda i: (i, 0))),
        compiler_params=pltpu.CompilerParams(
            dimension_semantics=("parallel",),
            vmem_limit_bytes=int(edge_vmem)),
        cost_estimate=edge_cost,
    )(x, w1, b1, w2, b2, we1, be1, we2, be2)

    # -------- message passing: true scatter-sum by dst (no dense adjacency) --------
    # TODO(synk): for very large E, sort edges by dst and accumulate per-segment
    # inside the kernel via PrefetchScalarGridSpec offsets instead of this
    # wrapper-level segment_sum.
    he = he_pad[:E]                                            # drop padded edge rows
    agg = jax.ops.segment_sum(he, dst, num_segments=N)         # [N, Dp]

    # -------- Pallas call 2: node MLP + fused residual, tiled over N --------
    node_pad_in = _pad2d(node_feats, N_pad, Dp)
    agg_pad = _pad2d(agg, N_pad, Dp)

    node_w_bytes = 4 * (2 * Dp * Dp + 2 * Dp)
    node_io_bytes = 4 * TN * (3 * Dp)
    node_vmem = 2 * node_io_bytes + 2 * node_w_bytes + (4 << 20)
    node_cost = pl.CostEstimate(
        flops=2 * N_pad * (2 * Dp * Dp),
        transcendentals=N_pad * Dp,
        bytes_accessed=4 * N_pad * (3 * Dp) + node_w_bytes)

    node_out_pad = pl.pallas_call(
        node_kernel,
        out_shape=jax.ShapeDtypeStruct((N_pad, Dp), jnp.float32),
        grid=(N_pad // TN,),
        in_specs=[pl.BlockSpec((TN, Dp), lambda i: (i, 0)),
                  pl.BlockSpec((TN, Dp), lambda i: (i, 0)),
                  w_spec((Dp, Dp)), w_spec((1, Dp)),
                  w_spec((Dp, Dp)), w_spec((1, Dp))],
        out_specs=pl.BlockSpec((TN, Dp), lambda i: (i, 0)),
        compiler_params=pltpu.CompilerParams(
            dimension_semantics=("parallel",),
            vmem_limit_bytes=int(node_vmem)),
        cost_estimate=node_cost,
    )(node_pad_in, agg_pad, wn1, bn1, wn2, bn2)

    node_out = node_out_pad[:N, :D]
    edge_out = edge_pad[:E, :R]
    return node_out, edge_out


# --------------------------------------------------------------------------
# Parameter init (xavier-uniform weights, zero biases; deterministic)
# --------------------------------------------------------------------------
def init_params(key, rbf_dim, dim):
    def xavier(key, fan_in, fan_out):
        a = math.sqrt(6.0 / (fan_in + fan_out))
        return jax.random.uniform(key, (fan_in, fan_out), jnp.float32, -a, a)

    ks = jax.random.split(key, 6)
    return {
        # EdgeUpdate.project_edge: Linear(2D+R, 2D) -> ssp -> Linear(2D, R)
        "eu_w1": xavier(ks[0], 2 * dim + rbf_dim, 2 * dim),
        "eu_b1": jnp.zeros((2 * dim,), jnp.float32),
        "eu_w2": xavier(ks[1], 2 * dim, rbf_dim),
        "eu_b2": jnp.zeros((rbf_dim,), jnp.float32),
        # EUCFConv.project_edge: Linear(R, D) -> ssp -> Linear(D, D)
        "ce_w1": xavier(ks[2], rbf_dim, dim),
        "ce_b1": jnp.zeros((dim,), jnp.float32),
        "ce_w2": xavier(ks[3], dim, dim),
        "ce_b2": jnp.zeros((dim,), jnp.float32),
        # EUCFConv.project_node2: Linear(D, D) -> ssp -> Linear(D, D)
        "cn_w1": xavier(ks[4], dim, dim),
        "cn_b1": jnp.zeros((dim,), jnp.float32),
        "cn_w2": xavier(ks[5], dim, dim),
        "cn_b2": jnp.zeros((dim,), jnp.float32),
    }


# --------------------------------------------------------------------------
# Pure-JAX reference for verification
# --------------------------------------------------------------------------
def reference(node_feats, edge_feats, src, dst, params):
    N = node_feats.shape[0]
    cat = jnp.concatenate([node_feats[src], node_feats[dst], edge_feats], axis=-1)
    e = _ssp(cat @ params["eu_w1"] + params["eu_b1"]) @ params["eu_w2"] + params["eu_b2"]
    he = _ssp(e @ params["ce_w1"] + params["ce_b1"]) @ params["ce_w2"] + params["ce_b2"]
    agg = jax.ops.segment_sum(he, dst, num_segments=N)
    nn_ = _ssp(agg @ params["cn_w1"] + params["cn_b1"]) @ params["cn_w2"] + params["cn_b2"]
    return node_feats + nn_, e


if __name__ == "__main__":
    N, E = 8, 16            # nodes, edges
    DIM, RBF = 32, 16       # hidden dim, rbf dim

    key = jax.random.PRNGKey(0)
    k_node, k_edge, k_src, k_dst, k_param = jax.random.split(key, 5)

    node_feats = jax.random.normal(k_node, (N, DIM), jnp.float32)
    edge_feats = jax.random.normal(k_edge, (E, RBF), jnp.float32)
    src = jax.random.randint(k_src, (E,), 0, N, jnp.int32)
    dst = jax.random.randint(k_dst, (E,), 0, N, jnp.int32)
    params = init_params(k_param, RBF, DIM)

    node_out, edge_out = nmpeu_interaction(node_feats, edge_feats, src, dst, params)
    node_out = jax.block_until_ready(node_out)
    edge_out = jax.block_until_ready(edge_out)

    node_ref, edge_ref = reference(node_feats, edge_feats, src, dst, params)
    assert jnp.allclose(node_out, node_ref, atol=1e-4, rtol=1e-4)
    assert jnp.allclose(edge_out, edge_ref, atol=1e-4, rtol=1e-4)

    print("KERNEL_OK")
</pallas_src>

<mosaic_0001>
module attributes {stable_mosaic.version = 11 : i64} {
  func.func @edge_kernel(%arg0: i32, %arg1: memref<16x128xf32, #tpu.memory_space<vmem>>, %arg2: memref<128x128xf32, #tpu.memory_space<vmem>>, %arg3: memref<1x128xf32, #tpu.memory_space<vmem>>, %arg4: memref<128x128xf32, #tpu.memory_space<vmem>>, %arg5: memref<1x128xf32, #tpu.memory_space<vmem>>, %arg6: memref<128x128xf32, #tpu.memory_space<vmem>>, %arg7: memref<1x128xf32, #tpu.memory_space<vmem>>, %arg8: memref<128x128xf32, #tpu.memory_space<vmem>>, %arg9: memref<1x128xf32, #tpu.memory_space<vmem>>, %arg10: memref<16x128xf32, #tpu.memory_space<vmem>>, %arg11: memref<16x128xf32, #tpu.memory_space<vmem>>) attributes {dimension_semantics = [#tpu.dimension_semantics<parallel>], iteration_bounds = array<i64: 1>, scalar_prefetch = 0 : i64, scratch_operands = 0 : i64, tpu.core_type = #tpu.core_type<tc>, window_params = [{transform_indices = @transform_0, window_bounds = array<i64: 16, 128>}, {pipeline_mode = #tpu.pipeline_mode<synchronous>, transform_indices = @transform_1, window_bounds = array<i64: 128, 128>}, {pipeline_mode = #tpu.pipeline_mode<synchronous>, transform_indices = @transform_2, window_bounds = array<i64: 1, 128>}, {pipeline_mode = #tpu.pipeline_mode<synchronous>, transform_indices = @transform_3, window_bounds = array<i64: 128, 128>}, {pipeline_mode = #tpu.pipeline_mode<synchronous>, transform_indices = @transform_4, window_bounds = array<i64: 1, 128>}, {pipeline_mode = #tpu.pipeline_mode<synchronous>, transform_indices = @transform_5, window_bounds = array<i64: 128, 128>}, {pipeline_mode = #tpu.pipeline_mode<synchronous>, transform_indices = @transform_6, window_bounds = array<i64: 1, 128>}, {pipeline_mode = #tpu.pipeline_mode<synchronous>, transform_indices = @transform_7, window_bounds = array<i64: 128, 128>}, {pipeline_mode = #tpu.pipeline_mode<synchronous>, transform_indices = @transform_8, window_bounds = array<i64: 1, 128>}, {transform_indices = @transform_9, window_bounds = array<i64: 16, 128>}, {transform_indices = @transform_10, window_bounds = array<i64: 16, 128>}]} {
    %c0 = arith.constant 0 : index
    %c0_0 = arith.constant 0 : index
    %0 = vector.load %arg1[%c0, %c0_0] : memref<16x128xf32, #tpu.memory_space<vmem>>, vector<16x128xf32>
    %c0_1 = arith.constant 0 : index
    %c0_2 = arith.constant 0 : index
    %1 = vector.load %arg2[%c0_1, %c0_2] : memref<128x128xf32, #tpu.memory_space<vmem>>, vector<128x128xf32>
    %cst = arith.constant dense<0.000000e+00> : vector<16x128xf32>
    %2 = tpu.matmul %0, %1, %cst {dimension_numbers = #tpu.dot_dimension_numbers<[1], [0], [0], [1], [0, 0, 1, 1], [], []>} : vector<16x128xf32>, vector<128x128xf32>, vector<16x128xf32> -> vector<16x128xf32>
    %c0_3 = arith.constant 0 : index
    %c0_4 = arith.constant 0 : index
    %3 = vector.load %arg3[%c0_3, %c0_4] : memref<1x128xf32, #tpu.memory_space<vmem>>, vector<1x128xf32>
    %4 = vector.broadcast %3 : vector<1x128xf32> to vector<16x128xf32>
    %5 = arith.addf %2, %4 : vector<16x128xf32>
    %cst_5 = arith.constant 0.000000e+00 : f32
    %6 = vector.broadcast %cst_5 : f32 to vector<16x128xf32>
    %7 = arith.maximumf %5, %6 : vector<16x128xf32>
    %8 = vector.broadcast %cst_5 : f32 to vector<16x128xf32>
    %9 = arith.subf %5, %8 : vector<16x128xf32>
    %10 = arith.cmpf one, %9, %9 : vector<16x128xf32>
    %11 = vector.broadcast %cst_5 : f32 to vector<16x128xf32>
    %12 = arith.addf %5, %11 : vector<16x128xf32>
    %13 = math.absf %9 : vector<16x128xf32>
    %cst_6 = arith.constant 0.000000e+00 : f32
    %14 = vector.broadcast %cst_6 : f32 to vector<16x128xf32>
    %15 = arith.subf %14, %13 : vector<16x128xf32>
    %16 = math.exp %15 : vector<16x128xf32>
    %17 = math.log1p %16 : vector<16x128xf32>
    %18 = arith.addf %7, %17 : vector<16x128xf32>
    %19 = arith.select %10, %12, %18 : vector<16x128xi1>, vector<16x128xf32>
    %cst_7 = arith.constant 2.000000e+00 : f32
    %20 = math.log %cst_7 : f32
    %21 = vector.broadcast %20 : f32 to vector<16x128xf32>
    %22 = arith.subf %19, %21 : vector<16x128xf32>
    %c0_8 = arith.constant 0 : index
    %c0_9 = arith.constant 0 : index
    %23 = vector.load %arg4[%c0_8, %c0_9] : memref<128x128xf32, #tpu.memory_space<vmem>>, vector<128x128xf32>
    %cst_10 = arith.constant dense<0.000000e+00> : vector<16x128xf32>
    %24 = tpu.matmul %22, %23, %cst_10 {dimension_numbers = #tpu.dot_dimension_numbers<[1], [0], [0], [1], [0, 0, 1, 1], [], []>} : vector<16x128xf32>, vector<128x128xf32>, vector<16x128xf32> -> vector<16x128xf32>
    %c0_11 = arith.constant 0 : index
    %c0_12 = arith.constant 0 : index
    %25 = vector.load %arg5[%c0_11, %c0_12] : memref<1x128xf32, #tpu.memory_space<vmem>>, vector<1x128xf32>
    %26 = vector.broadcast %25 : vector<1x128xf32> to vector<16x128xf32>
    %27 = arith.addf %24, %26 : vector<16x128xf32>
    %c0_13 = arith.constant 0 : index
    %c0_14 = arith.constant 0 : index
    %28 = vector.load %arg10[%c0_13, %c0_14] : memref<16x128xf32, #tpu.memory_space<vmem>>, vector<16x128xf32>
    tpu.vector_store %arg10[%c0_13, %c0_14], %27 {strides = array<i32>} : memref<16x128xf32, #tpu.memory_space<vmem>>, vector<16x128xf32>,
    %c0_15 = arith.constant 0 : index
    %c0_16 = arith.constant 0 : index
    %29 = vector.load %arg6[%c0_15, %c0_16] : memref<128x128xf32, #tpu.memory_space<vmem>>, vector<128x128xf32>
    %cst_17 = arith.constant dense<0.000000e+00> : vector<16x128xf32>
    %30 = tpu.matmul %27, %29, %cst_17 {dimension_numbers = #tpu.dot_dimension_numbers<[1], [0], [0], [1], [0, 0, 1, 1], [], []>} : vector<16x128xf32>, vector<128x128xf32>, vector<16x128xf32> -> vector<16x128xf32>
    %c0_18 = arith.constant 0 : index
    %c0_19 = arith.constant 0 : index
    %31 = vector.load %arg7[%c0_18, %c0_19] : memref<1x128xf32, #tpu.memory_space<vmem>>, vector<1x128xf32>
    %32 = vector.broadcast %31 : vector<1x128xf32> to vector<16x128xf32>
    %33 = arith.addf %30, %32 : vector<16x128xf32>
    %cst_20 = arith.constant 0.000000e+00 : f32
    %34 = vector.broadcast %cst_20 : f32 to vector<16x128xf32>
    %35 = arith.maximumf %33, %34 : vector<16x128xf32>
    %36 = vector.broadcast %cst_20 : f32 to vector<16x128xf32>
    %37 = arith.subf %33, %36 : vector<16x128xf32>
    %38 = arith.cmpf one, %37, %37 : vector<16x128xf32>
    %39 = vector.broadcast %cst_20 : f32 to vector<16x128xf32>
    %40 = arith.addf %33, %39 : vector<16x128xf32>
    %41 = math.absf %37 : vector<16x128xf32>
    %cst_21 = arith.constant 0.000000e+00 : f32
    %42 = vector.broadcast %cst_21 : f32 to vector<16x128xf32>
    %43 = arith.subf %42, %41 : vector<16x128xf32>
    %44 = math.exp %43 : vector<16x128xf32>
    %45 = math.log1p %44 : vector<16x128xf32>
    %46 = arith.addf %35, %45 : vector<16x128xf32>
    %47 = arith.select %38, %40, %46 : vector<16x128xi1>, vector<16x128xf32>
    %cst_22 = arith.constant 2.000000e+00 : f32
    %48 = math.log %cst_22 : f32
    %49 = vector.broadcast %48 : f32 to vector<16x128xf32>
    %50 = arith.subf %47, %49 : vector<16x128xf32>
    %c0_23 = arith.constant 0 : index
    %c0_24 = arith.constant 0 : index
    %51 = vector.load %arg8[%c0_23, %c0_24] : memref<128x128xf32, #tpu.memory_space<vmem>>, vector<128x128xf32>
    %cst_25 = arith.constant dense<0.000000e+00> : vector<16x128xf32>
    %52 = tpu.matmul %50, %51, %cst_25 {dimension_numbers = #tpu.dot_dimension_numbers<[1], [0], [0], [1], [0, 0, 1, 1], [], []>} : vector<16x128xf32>, vector<128x128xf32>, vector<16x128xf32> -> vector<16x128xf32>
    %c0_26 = arith.constant 0 : index
    %c0_27 = arith.constant 0 : index
    %53 = vector.load %arg9[%c0_26, %c0_27] : memref<1x128xf32, #tpu.memory_space<vmem>>, vector<1x128xf32>
    %54 = vector.broadcast %53 : vector<1x128xf32> to vector<16x128xf32>
    %55 = arith.addf %52, %54 : vector<16x128xf32>
    %c0_28 = arith.constant 0 : index
    %c0_29 = arith.constant 0 : index
    %56 = vector.load %arg11[%c0_28, %c0_29] : memref<16x128xf32, #tpu.memory_space<vmem>>, vector<16x128xf32>
    tpu.vector_store %arg11[%c0_28, %c0_29], %55 {strides = array<i32>} : memref<16x128xf32, #tpu.memory_space<vmem>>, vector<16x128xf32>,
    return
  }
  func.func @transform_0(%arg0: i32) -> (i32, i32) {
    %c0_i32 = arith.constant 0 : i32
    %c0_i32_0 = arith.constant 0 : i32
    return %arg0, %c0_i32 : i32, i32
  }
  func.func @transform_1(%arg0: i32) -> (i32, i32) {
    %c0_i32 = arith.constant 0 : i32
    %c0_i32_0 = arith.constant 0 : i32
    %c0_i32_1 = arith.constant 0 : i32
    return %c0_i32, %c0_i32_0 : i32, i32
  }
  func.func @transform_2(%arg0: i32) -> (i32, i32) {
    %c0_i32 = arith.constant 0 : i32
    %c0_i32_0 = arith.constant 0 : i32
    %c0_i32_1 = arith.constant 0 : i32
    return %c0_i32, %c0_i32_0 : i32, i32
  }
  func.func @transform_3(%arg0: i32) -> (i32, i32) {
    %c0_i32 = arith.constant 0 : i32
    %c0_i32_0 = arith.constant 0 : i32
    %c0_i32_1 = arith.constant 0 : i32
    return %c0_i32, %c0_i32_0 : i32, i32
  }
  func.func @transform_4(%arg0: i32) -> (i32, i32) {
    %c0_i32 = arith.constant 0 : i32
    %c0_i32_0 = arith.constant 0 : i32
    %c0_i32_1 = arith.constant 0 : i32
    return %c0_i32, %c0_i32_0 : i32, i32
  }
  func.func @transform_5(%arg0: i32) -> (i32, i32) {
    %c0_i32 = arith.constant 0 : i32
    %c0_i32_0 = arith.constant 0 : i32
    %c0_i32_1 = arith.constant 0 : i32
    return %c0_i32, %c0_i32_0 : i32, i32
  }
  func.func @transform_6(%arg0: i32) -> (i32, i32) {
    %c0_i32 = arith.constant 0 : i32
    %c0_i32_0 = arith.constant 0 : i32
    %c0_i32_1 = arith.constant 0 : i32
    return %c0_i32, %c0_i32_0 : i32, i32
  }
  func.func @transform_7(%arg0: i32) -> (i32, i32) {
    %c0_i32 = arith.constant 0 : i32
    %c0_i32_0 = arith.constant 0 : i32
    %c0_i32_1 = arith.constant 0 : i32
    return %c0_i32, %c0_i32_0 : i32, i32
  }
  func.func @transform_8(%arg0: i32) -> (i32, i32) {
    %c0_i32 = arith.constant 0 : i32
    %c0_i32_0 = arith.constant 0 : i32
    %c0_i32_1 = arith.constant 0 : i32
    return %c0_i32, %c0_i32_0 : i32, i32
  }
  func.func @transform_9(%arg0: i32) -> (i32, i32) {
    %c0_i32 = arith.constant 0 : i32
    %c0_i32_0 = arith.constant 0 : i32
    return %arg0, %c0_i32 : i32, i32
  }
  func.func @transform_10(%arg0: i32) -> (i32, i32) {
    %c0_i32 = arith.constant 0 : i32
    %c0_i32_0 = arith.constant 0 : i32
    return %arg0, %c0_i32 : i32, i32
  }
}

</mosaic_0001>

<bundles_post_ra>
// kernel: tpu_custom_call.1
= control target key start
LH: loop header
LB: loop body
LE: loop exit
PB: predicated region body
PF: predicated region fallthrough
CT: control target
= control target key end

     0   :  { %16 = vsyncpa [#allocation3], 0  ;;  %s1126_s0 = inlined_call_operand.hbm [shape: f32[16,128], index: 0, kind: input, shape index: {}]   ;;  %s1127_s1 = inlined_call_operand.hbm [shape: f32[128,128], index: 1, kind: input, shape index: {}]   ;;  %s1128_s2 = inlined_call_operand.vmem [shape: f32[1,128], index: 2, kind: input, shape index: {}]   ;;  %s1129_s3 = inlined_call_operand.hbm [shape: f32[128,128], index: 3, kind: input, shape index: {}]   ;;  %s1130_s4 = inlined_call_operand.vmem [shape: f32[1,128], index: 4, kind: input, shape index: {}]   ;;  %s1131_s5 = inlined_call_operand.hbm [shape: f32[128,128], index: 5, kind: input, shape index: {}]   ;;  %s1132_s6 = inlined_call_operand.vmem [shape: f32[1,128], index: 6, kind: input, shape index: {}]   ;;  %s1133_s7 = inlined_call_operand.hbm [shape: f32[128,128], index: 7, kind: input, shape index: {}]   ;;  %s1134_s8 = inlined_call_operand.vmem [shape: f32[1,128], index: 8, kind: input, shape index: {}]   ;;  %s1135_s9 = inlined_call_operand.hbm [shape: f32[16,128], index: 9, kind: output, shape index: {0}]   ;;  %s1136_s10 = inlined_call_operand.hbm [shape: f32[16,128], index: 10, kind: output, shape index: {1}]  }
   0x1   :  { %17 = vsyncpa [#allocation6], 0 }
   0x2   :  { %18 = vsyncpa [#allocation9], 0 }
   0x3   :  { %19 = vsyncpa [#allocation4], 0 }
   0x4   :  { %20 = vsyncpa [#allocation13], 0  ;;  %s1008_s13 = smov [#allocation5]   ;;  %s1009_s15 = smov [#allocation8]  }
   0x5   :  { %s38_s14 = sshll.u32 %s1008_s13, 4  ;;  %s66_s16 = sshll.u32 %s1009_s15, 4  ;;  %s39_s14 = int_to_ptr.vmem [resolvable:$true] %s38_s14  ;;  %s67_s16 = int_to_ptr.vmem [resolvable:$true] %s66_s16 }
   0x6   :  { %s866_s17 = scalar_lea.vmem %s39_s14, 2048  ;;  %p871_p1 = scmp.lt.s32.totalorder %s39_s14, %s39_s14 }
   0x7   :  { %p867_p0 = scmp.ne.s32.totalorder %s39_s14, %s866_s17  ;;  %p872_p2 = scmp.lt.s32.totalorder %s866_s17, %s866_s17 }
   0x9   :  { %p873_p3 = por %p872_p2, %p871_p1 }
   0xb   :  { %p874_p4 = pnand %p873_p3, %p867_p0 }
   0xd   :  { %877 = shalt.err (!%p874_p4)
}
   0xe   :  { %s1010_s18 = smov 128   ;;  %s1011_s19 = smov 8  }
   0xf   :  { %44 = dma.hbm_to_vmem [thread:$0]  %s1127_s1, 2048, %s39_s14, [#allocation6], %s1010_s18, %s1010_s18, %s1011_s19  }
  0x10   :  { %s886_s22 = scalar_lea.vmem %s67_s16, 2048  ;;  %p891_p6 = scmp.lt.s32.totalorder %s67_s16, %s67_s16 }
  0x11   :  { %p887_p5 = scmp.ne.s32.totalorder %s67_s16, %s886_s22  ;;  %p892_p7 = scmp.lt.s32.totalorder %s886_s22, %s886_s22 }
  0x13   :  { %p893_p8 = por %p892_p7, %p891_p6 }
  0x15   :  { %p894_p9 = pnand %p893_p8, %p887_p5 }
  0x17   :  { %897 = shalt.err (!%p894_p9)
}
  0x18   :  { %72 = dma.hbm_to_vmem [thread:$0]  %s1131_s5, 2048, %s67_s16, [#allocation9], %s1010_s18, %s1010_s18, %s1011_s19  }
  0x19   :  { %s1012_s25 = smov [#allocation2]   ;;  %s1013_s27 = smov [#allocation7]  }
  0x1a   :  { %s26_s26 = sshll.u32 %s1012_s25, 4  ;;  %s52_s28 = sshll.u32 %s1013_s27, 4  ;;  %s27_s26 = int_to_ptr.vmem [resolvable:$true] %s26_s26  ;;  %s53_s28 = int_to_ptr.vmem [resolvable:$true] %s52_s28 }
  0x1b   :  { %s906_s1 = scalar_lea.vmem %s27_s26, 256  ;;  %p911_p11 = scmp.lt.s32.totalorder %s27_s26, %s27_s26 }
  0x1c   :  { %p907_p10 = scmp.ne.s32.totalorder %s27_s26, %s906_s1  ;;  %p912_p12 = scmp.lt.s32.totalorder %s906_s1, %s906_s1 }
  0x1e   :  { %p913_p13 = por %p912_p12, %p911_p11 }
  0x20   :  { %p914_p0 = pnand %p913_p13, %p907_p10 }
  0x22   :  { %917 = shalt.err (!%p914_p0)
}
  0x23   :  { %32 = dma.hbm_to_vmem [thread:$0]  %s1126_s0, 256, %s27_s26, [#allocation3], %s1010_s18, %s1010_s18, %s1011_s19  }
  0x24   :  { %s926_s5 = scalar_lea.vmem %s53_s28, 2048  ;;  %p931_p2 = scmp.lt.s32.totalorder %s53_s28, %s53_s28 }
  0x25   :  { %p927_p1 = scmp.ne.s32.totalorder %s53_s28, %s926_s5  ;;  %p932_p3 = scmp.lt.s32.totalorder %s926_s5, %s926_s5 }
  0x27   :  { %p933_p4 = por %p932_p3, %p931_p2 }
  0x29   :  { %p934_p5 = pnand %p933_p4, %p927_p1 }
  0x2b   :  { %937 = shalt.err (!%p934_p5)
}
  0x2c   :  { %58 = dma.hbm_to_vmem [thread:$0]  %s1129_s3, 2048, %s53_s28, [#allocation6], %s1010_s18, %s1010_s18, %s1011_s19  }
  0x2d   :  { %s1014_s13 = smov [#allocation10]  }
  0x2e   :  { %s80_s14 = sshll.u32 %s1014_s13, 4  ;;  %s81_s14 = int_to_ptr.vmem [resolvable:$true] %s80_s14 }
  0x2f   :  { %s946_s15 = scalar_lea.vmem %s81_s14, 2048  ;;  %p951_p7 = scmp.lt.s32.totalorder %s81_s14, %s81_s14 }
  0x30   :  { %p947_p6 = scmp.ne.s32.totalorder %s81_s14, %s946_s15  ;;  %p952_p8 = scmp.lt.s32.totalorder %s946_s15, %s946_s15 }
  0x32   :  { %p953_p9 = por %p952_p8, %p951_p7 }
  0x34   :  { %p954_p10 = pnand %p953_p9, %p947_p6 }
  0x36   :  { %957 = shalt.err (!%p954_p10)
}
  0x37   :  { %86 = dma.hbm_to_vmem [thread:$0]  %s1133_s7, 2048, %s81_s14, [#allocation9], %s1010_s18, %s1010_s18, %s1011_s19  }
  0x38   :  { %998 = dma.done.wait [#allocation3], 256  }
  0x39   :  { %999 = vsyncadd [#allocation3], 4294967040 }
  0x3a   :  { %1000 = dma.done.wait [#allocation6], 4096  }
  0x3b   :  { %1001 = vsyncadd [#allocation6], 4294963200 }
  0x3c   :  { %1002 = dma.done.wait [#allocation9], 4096  }
  0x3d   :  { %1003 = vsyncadd [#allocation9], 4294963200  ;;  %v121_v0 = vld [vmem:[#allocation5 + $0x78] sm:$0xff]  ;;  %v120_v1 = vld [vmem:[#allocation5 + $0x70] sm:$0xff] }
  0x3e   :  { %693 = vmatprep.subr.mxu0 %v121_v0  ;;  %v119_v2 = vld [vmem:[#allocation5 + $0x68] sm:$0xff]  ;;  %v118_v3 = vld [vmem:[#allocation5 + $0x60] sm:$0xff]  ;;  %v104_v4 = vld [vmem:[#allocation2] sm:$0xff] }
  0x3f   :  { %694 = vmatpush3.msra.mxu0 %v121_v0  ;;  %v117_v5 = vld [vmem:[#allocation5 + $0x58] sm:$0xff]  ;;  %725 = vmatprep.mubr.f32.mxu0 %v104_v4  ;;  %v116_v6 = vld [vmem:[#allocation5 + $0x50] sm:$0xff]  ;;  %v115_v7 = vld [vmem:[#allocation5 + $0x48] sm:$0xff] }
  0x40   :  { %695 = vmatprep.subr.mxu0 %v120_v1  ;;  %v114_v8 = vld [vmem:[#allocation5 + $0x40] sm:$0xff]  ;;  %v113_v9 = vld [vmem:[#allocation5 + $0x38] sm:$0xff]  ;;  %v112_v10 = vld [vmem:[#allocation5 + $0x30] sm:$0xff] }
  0x41   :  { %696 = vmatpush3.msra.mxu0 %v120_v1  ;;  %v111_v11 = vld [vmem:[#allocation5 + $0x28] sm:$0xff]  ;;  %v110_v12 = vld [vmem:[#allocation5 + $0x20] sm:$0xff]  ;;  %v109_v13 = vld [vmem:[#allocation5 + $0x18] sm:$0xff] }
  0x42   :  { %697 = vmatprep.subr.mxu0 %v119_v2  ;;  %v108_v14 = vld [vmem:[#allocation5 + $0x10] sm:$0xff]  ;;  %v107_v15 = vld [vmem:[#allocation5 + $0x8] sm:$0xff]  ;;  %v106_v16 = vld [vmem:[#allocation5] sm:$0xff] }
  0x43   :  { %698 = vmatpush3.msra.mxu0 %v119_v2  ;;  %v105_v17 = vld [vmem:[#allocation2 + $0x8] sm:$0xff]  ;;  %v256_v19 = vld [vmem:[#allocation7 + $0x70] sm:$0xff]  ;;  %v255_v20 = vld [vmem:[#allocation7 + $0x68] sm:$0xff] }
  0x44   :  { %699 = vmatprep.subr.mxu0 %v118_v3  ;;  %v257_v18 = vld [vmem:[#allocation7 + $0x78] sm:$0xff]  ;;  %v254_v21 = vld [vmem:[#allocation7 + $0x60] sm:$0xff]  ;;  %v252_v23 = vld [vmem:[#allocation7 + $0x50] sm:$0xff] }
  0x45   :  { %700 = vmatpush3.msra.mxu0 %v118_v3  ;;  %728 = vmatprep.subr.mxu1 %v257_v18  ;;  %v253_v22 = vld [vmem:[#allocation7 + $0x58] sm:$0xff]  ;;  %v251_v24 = vld [vmem:[#allocation7 + $0x48] sm:$0xff]  ;;  %v250_v25 = vld [vmem:[#allocation7 + $0x40] sm:$0xff] }
  0x46   :  { %701 = vmatprep.subr.mxu0 %v117_v5  ;;  %729 = vmatpush3.msra.mxu1 %v257_v18  ;;  %v249_v26 = vld [vmem:[#allocation7 + $0x38] sm:$0xff]  ;;  %v248_v27 = vld [vmem:[#allocation7 + $0x30] sm:$0xff]  ;;  %v247_v28 = vld [vmem:[#allocation7 + $0x28] sm:$0xff] }
  0x47   :  { %702 = vmatpush3.msra.mxu0 %v117_v5  ;;  %730 = vmatprep.subr.mxu1 %v256_v19  ;;  %v246_v29 = vld [vmem:[#allocation7 + $0x20] sm:$0xff]  ;;  %v245_v30 = vld [vmem:[#allocation7 + $0x18] sm:$0xff]  ;;  %v244_v31 = vld [vmem:[#allocation7 + $0x10] sm:$0xff] }
  0x48   :  { %703 = vmatprep.subr.mxu0 %v116_v6  ;;  %731 = vmatpush3.msra.mxu1 %v256_v19  ;;  %v243_v32 = vld [vmem:[#allocation7 + $0x8] sm:$0xff]  ;;  %v242_v33 = vld [vmem:[#allocation7] sm:$0xff]  ;;  %v357_v34 = vld [vmem:[#allocation8 + $0x78] sm:$0xff] }
  0x49   :  { %704 = vmatpush3.msra.mxu0 %v116_v6  ;;  %732 = vmatprep.subr.mxu1 %v255_v20  ;;  %v356_v35 = vld [vmem:[#allocation8 + $0x70] sm:$0xff]  ;;  %v355_v36 = vld [vmem:[#allocation8 + $0x68] sm:$0xff]  ;;  %v354_v37 = vld [vmem:[#allocation8 + $0x60] sm:$0xff] }
  0x4a   :  { %705 = vmatprep.subr.mxu0 %v115_v7  ;;  %733 = vmatpush3.msra.mxu1 %v255_v20  ;;  %v353_v38 = vld [vmem:[#allocation8 + $0x58] sm:$0xff]  ;;  %v352_v39 = vld [vmem:[#allocation8 + $0x50] sm:$0xff]  ;;  %v351_v40 = vld [vmem:[#allocation8 + $0x48] sm:$0xff] }
  0x4b   :  { %706 = vmatpush3.msra.mxu0 %v115_v7  ;;  %734 = vmatprep.subr.mxu1 %v254_v21  ;;  %v350_v41 = vld [vmem:[#allocation8 + $0x40] sm:$0xff]  ;;  %v349_v42 = vld [vmem:[#allocation8 + $0x38] sm:$0xff]  ;;  %v348_v43 = vld [vmem:[#allocation8 + $0x30] sm:$0xff] }
  0x4c   :  { %707 = vmatprep.subr.mxu0 %v114_v8  ;;  %735 = vmatpush3.msra.mxu1 %v254_v21  ;;  %v347_v44 = vld [vmem:[#allocation8 + $0x28] sm:$0xff]  ;;  %v346_v45 = vld [vmem:[#allocation8 + $0x20] sm:$0xff]  ;;  %v345_v46 = vld [vmem:[#allocation8 + $0x18] sm:$0xff] }
  0x4d   :  { %708 = vmatpush3.msra.mxu0 %v114_v8  ;;  %736 = vmatprep.subr.mxu1 %v253_v22  ;;  %v613_v47 = vld [vmem:[%s1128_s2] ss:$0 sm:$0xff]  ;;  %v343_v21 = vld [vmem:[#allocation8 + $0x8] sm:$0xff] }
  0x4e   :  { %709 = vmatprep.subr.mxu0 %v113_v9  ;;  %737 = vmatpush3.msra.mxu1 %v253_v22  ;;  %v344_v20 = vld [vmem:[#allocation8 + $0x10] sm:$0xff]  ;;  %v342_v22 = vld [vmem:[#allocation8] sm:$0xff] }
  0x4f   :  { %710 = vmatpush3.msra.mxu0 %v113_v9  ;;  %738 = vmatprep.subr.mxu1 %v252_v23 }
  0x50   :  { %711 = vmatprep.subr.mxu0 %v112_v10  ;;  %739 = vmatpush3.msra.mxu1 %v252_v23  ;;  %v616_v23 = vld [vmem:[%s1130_s4] ss:$0 sm:$0xff] }
  0x51   :  { %712 = vmatpush3.msra.mxu0 %v112_v10  ;;  %740 = vmatprep.subr.mxu1 %v251_v24 }
  0x52   :  { %713 = vmatprep.subr.mxu0 %v111_v11  ;;  %741 = vmatpush3.msra.mxu1 %v251_v24 }
  0x53   :  { %714 = vmatpush3.msra.mxu0 %v111_v11  ;;  %742 = vmatprep.subr.mxu1 %v250_v25 }
  0x54   :  { %715 = vmatprep.subr.mxu0 %v110_v12  ;;  %743 = vmatpush3.msra.mxu1 %v250_v25 }
  0x55   :  { %716 = vmatpush3.msra.mxu0 %v110_v12  ;;  %744 = vmatprep.subr.mxu1 %v249_v26 }
  0x56   :  { %717 = vmatprep.subr.mxu0 %v109_v13  ;;  %745 = vmatpush3.msra.mxu1 %v249_v26 }
  0x57   :  { %718 = vmatpush3.msra.mxu0 %v109_v13  ;;  %746 = vmatprep.subr.mxu1 %v248_v27 }
  0x58   :  { %719 = vmatprep.subr.mxu0 %v108_v14  ;;  %747 = vmatpush3.msra.mxu1 %v248_v27 }
  0x59   :  { %720 = vmatpush3.msra.mxu0 %v108_v14  ;;  %748 = vmatprep.subr.mxu1 %v247_v28 }
  0x5a   :  { %721 = vmatprep.subr.mxu0 %v107_v15  ;;  %749 = vmatpush3.msra.mxu1 %v247_v28  ;;  %v493_v28 = vld [vmem:[#allocation10 + $0x78] sm:$0xff] }
  0x5b   :  { %722 = vmatpush3.msra.mxu0 %v107_v15  ;;  %750 = vmatprep.subr.mxu1 %v246_v29 }
  0x5c   :  { %723 = vmatprep.subr.mxu0 %v106_v16  ;;  %751 = vmatpush3.msra.mxu1 %v246_v29  ;;  %v492_v29 = vld [vmem:[#allocation10 + $0x70] sm:$0xff] }
  0x5d   :  { %724 = vmatpush3.msra.mxu0 %v106_v16  ;;  %752 = vmatprep.subr.mxu1 %v245_v30 }
  0x5e   :  { %726 = vmatmul.mubr.f32.vlgmr.msra.gmra.mxu0 %v105_v17  ;;  %753 = vmatpush3.msra.mxu1 %v245_v30  ;;  %v491_v30 = vld [vmem:[#allocation10 + $0x68] sm:$0xff] }
  0x5f   :  { %754 = vmatprep.subr.mxu1 %v244_v31  ;;  %763 = vmatprep.subr.mxu0 %v357_v34 }
  0x60   :  { %755 = vmatpush3.msra.mxu1 %v244_v31  ;;  %764 = vmatpush3.msra.mxu0 %v357_v34  ;;  %v490_v31 = vld [vmem:[#allocation10 + $0x60] sm:$0xff]  ;;  %v487_v34 = vld [vmem:[#allocation10 + $0x48] sm:$0xff] }
  0x61   :  { %756 = vmatprep.subr.mxu1 %v243_v32  ;;  %765 = vmatprep.subr.mxu0 %v356_v35 }
  0x62   :  { %757 = vmatpush3.msra.mxu1 %v243_v32  ;;  %766 = vmatpush3.msra.mxu0 %v356_v35  ;;  %v489_v32 = vld [vmem:[#allocation10 + $0x58] sm:$0xff]  ;;  %v486_v35 = vld [vmem:[#allocation10 + $0x40] sm:$0xff] }
  0x63   :  { %758 = vmatprep.subr.mxu1 %v242_v33  ;;  %767 = vmatprep.subr.mxu0 %v355_v36 }
  0x64   :  { %759 = vmatpush3.msra.mxu1 %v242_v33  ;;  %768 = vmatpush3.msra.mxu0 %v355_v36  ;;  %v488_v33 = vld [vmem:[#allocation10 + $0x50] sm:$0xff]  ;;  %v485_v36 = vld [vmem:[#allocation10 + $0x38] sm:$0xff] }
  0x65   :  { %769 = vmatprep.subr.mxu0 %v354_v37  ;;  %798 = vmatprep.subr.mxu1 %v493_v28 }
  0x66   :  { %770 = vmatpush3.msra.mxu0 %v354_v37  ;;  %v484_v37 = vld [vmem:[#allocation10 + $0x30] sm:$0xff] }
  0x67   :  { %771 = vmatprep.subr.mxu0 %v353_v38 }
  0x68   :  { %772 = vmatpush3.msra.mxu0 %v353_v38  ;;  %v483_v38 = vld [vmem:[#allocation10 + $0x28] sm:$0xff] }
  0x69   :  { %773 = vmatprep.subr.mxu0 %v352_v39 }
  0x6a   :  { %774 = vmatpush3.msra.mxu0 %v352_v39  ;;  %v482_v39 = vld [vmem:[#allocation10 + $0x20] sm:$0xff] }
  0x6b   :  { %775 = vmatprep.subr.mxu0 %v351_v40 }
  0x6c   :  { %776 = vmatpush3.msra.mxu0 %v351_v40  ;;  %v481_v40 = vld [vmem:[#allocation10 + $0x18] sm:$0xff] }
  0x6d   :  { %777 = vmatprep.subr.mxu0 %v350_v41 }
  0x6e   :  { %778 = vmatpush3.msra.mxu0 %v350_v41  ;;  %v480_v41 = vld [vmem:[#allocation10 + $0x10] sm:$0xff] }
  0x6f   :  { %779 = vmatprep.subr.mxu0 %v349_v42 }
  0x70   :  { %780 = vmatpush3.msra.mxu0 %v349_v42  ;;  %v479_v42 = vld [vmem:[#allocation10 + $0x8] sm:$0xff] }
  0x71   :  { %781 = vmatprep.subr.mxu0 %v348_v43 }
  0x72   :  { %782 = vmatpush3.msra.mxu0 %v348_v43  ;;  %v478_v43 = vld [vmem:[#allocation10] sm:$0xff] }
  0x73   :  { %783 = vmatprep.subr.mxu0 %v347_v44 }
  0x74   :  { %784 = vmatpush3.msra.mxu0 %v347_v44  ;;  %v617_v44 = vld [vmem:[%s1132_s6] ss:$0 sm:$0xff]  ;;  %s1015_s6 = smov [#allocation11]  }
  0x75   :  { %785 = vmatprep.subr.mxu0 %v346_v45  ;;  %s583_s21 = sshll.u32 %s1015_s6, 4  ;;  %s584_s21 = int_to_ptr.vmem [resolvable:$true] %s583_s21 }
  0x76   :  { %786 = vmatpush3.msra.mxu0 %v346_v45  ;;  %s958_s22 = scalar_lea.vmem %s584_s21, 256  ;;  %p963_p12 = scmp.lt.s32.totalorder %s584_s21, %s584_s21 }
  0x77   :  { %787 = vmatprep.subr.mxu0 %v345_v46  ;;  %p959_p11 = scmp.ne.s32.totalorder %s584_s21, %s958_s22  ;;  %p964_p13 = scmp.lt.s32.totalorder %s958_s22, %s958_s22 }
  0x78   :  { %788 = vmatpush3.msra.mxu0 %v345_v46 }
  0x79   :  { %789 = vmatprep.subr.mxu0 %v344_v20  ;;  %p965_p0 = por %p964_p13, %p963_p12 }
  0x7a   :  { %790 = vmatpush3.msra.mxu0 %v344_v20 }
  0x7b   :  { %791 = vmatprep.subr.mxu0 %v343_v21  ;;  %p966_p1 = pnand %p965_p0, %p959_p11 }
  0x7c   :  { %792 = vmatpush3.msra.mxu0 %v343_v21 }
  0x7d   :  { %793 = vmatprep.subr.mxu0 %v342_v22 }
  0x7e   :  { %794 = vmatpush3.msra.mxu0 %v342_v22 }
 0x11e   :  { %v727_v48 = vpop.f32.mrf.mxu0 }
 0x11f   :  { %v201_v49 = vadd.f32 %v727_v48, %v613_v47 }
 0x120   :  { %v195_v50 = vpop.f32.mrf.mxu0 }
 0x121   :  { %v211_v51 = vand.u32 2147483647, %v201_v49  ;;  %v196_v52 = vadd.f32 %v613_v47, %v195_v50  ;;  %v205_v8 = vmax.f32 %v201_v49, 0.0  ;;  %vm207_vm2 = vcmp.ne.f32.partialorder %v201_v49, %v201_v49 }
 0x123   :  { %v213_v53 = vsub.f32 0.0, %v211_v51  ;;  %v210_v54 = vand.u32 2147483647, %v196_v52  ;;  %v204_v12 = vmax.f32 %v196_v52, 0.0  ;;  %vm206_vm3 = vcmp.ne.f32.partialorder %v196_v52, %v196_v52 }
 0x125   :  { %v216_v55 = vmul.f32 1.442695, %v213_v53  ;;  %v212_v56 = vsub.f32 0.0, %v210_v54 }
 0x127   :  { %842 = vpow2.f32 %v216_v55  ;;  %v214_v57 = vmul.f32 1.442695, %v212_v56 }
 0x129   :  { %844 = vpow2.f32 %v214_v57 }
 0x134   :  { %v843_v58 = vpop.eup %842 }
 0x135   :  { %v227_v59 = vadd.f32 1.0, %v843_v58  ;;  %v230_v62 = vmul.f32 -0.5, %v843_v58  ;;  %v233_v1 = vand.u32 2147483647, %v843_v58 }
 0x136   :  { %v845_v60 = vpop.eup %844 }
 0x137   :  { %v218_v61 = vadd.f32 1.0, %v845_v60  ;;  %846 = vlog2.f32 %v227_v59  ;;  %v221_v63 = vmul.f32 -0.5, %v845_v60  ;;  %v231_v0 = vadd.f32 1.0, %v230_v62 }
 0x138   :  { %v224_v4 = vand.u32 2147483647, %v845_v60  ;;  %vm234_vm0 = vcmp.lt.f32.partialorder %v233_v1, 0.0004427343 }
 0x139   :  { %848 = vlog2.f32 %v218_v61  ;;  %v222_v2 = vadd.f32 1.0, %v221_v63  ;;  %v232_v6 = vmul.f32 %v843_v58, %v231_v0 }
 0x13a   :  { %vm225_vm1 = vcmp.lt.f32.partialorder %v224_v4, 0.0004427343 }
 0x13b   :  { %v223_v10 = vmul.f32 %v845_v60, %v222_v2 }
 0x144   :  { %v847_v3 = vpop.eup %846 }
 0x145   :  { %v229_v5 = vmul.f32 0.6931472, %v847_v3 }
 0x146   :  { %v849_v7 = vpop.eup %848 }
 0x147   :  { %v220_v9 = vmul.f32 0.6931472, %v849_v7  ;;  %v235_v11 = vsel %vm234_vm0, %v232_v6, %v229_v5 }
 0x148   :  { %v237_v13 = vadd.f32 %v235_v11, %v205_v8 }
 0x149   :  { %v226_v14 = vsel %vm225_vm1, %v223_v10, %v220_v9 }
 0x14a   :  { %v236_v15 = vadd.f32 %v226_v14, %v204_v12  ;;  %v239_v16 = vsel %vm207_vm2, %v201_v49, %v237_v13 }
 0x14b   :  { %v615_v19 = vadd.f32 -0.6931472, %v239_v16 }
 0x14c   :  { %v238_v17 = vsel %vm206_vm3, %v196_v52, %v236_v15 }
 0x14d   :  { %v614_v18 = vadd.f32 -0.6931472, %v238_v17 }
 0x14f   :  { %760 = vmatprep.mubr.f32.mxu1 %v614_v18 }
 0x150   :  { %761 = vmatmul.mubr.f32.vlgmr.msra.gmra.mxu1 %v615_v19 }
 0x151   :  { %799 = vmatpush3.msra.mxu1 %v493_v28 }
 0x152   :  { %800 = vmatprep.subr.mxu1 %v492_v29 }
 0x153   :  { %801 = vmatpush3.msra.mxu1 %v492_v29 }
 0x154   :  { %802 = vmatprep.subr.mxu1 %v491_v30 }
 0x155   :  { %803 = vmatpush3.msra.mxu1 %v491_v30 }
 0x156   :  { %804 = vmatprep.subr.mxu1 %v490_v31 }
 0x157   :  { %805 = vmatpush3.msra.mxu1 %v490_v31 }
 0x158   :  { %806 = vmatprep.subr.mxu1 %v489_v32 }
 0x159   :  { %807 = vmatpush3.msra.mxu1 %v489_v32 }
 0x15a   :  { %808 = vmatprep.subr.mxu1 %v488_v33 }
 0x15b   :  { %809 = vmatpush3.msra.mxu1 %v488_v33 }
 0x15c   :  { %810 = vmatprep.subr.mxu1 %v487_v34 }
 0x15d   :  { %811 = vmatpush3.msra.mxu1 %v487_v34 }
 0x15e   :  { %812 = vmatprep.subr.mxu1 %v486_v35 }
 0x15f   :  { %813 = vmatpush3.msra.mxu1 %v486_v35 }
 0x160   :  { %814 = vmatprep.subr.mxu1 %v485_v36 }
 0x161   :  { %815 = vmatpush3.msra.mxu1 %v485_v36 }
 0x162   :  { %816 = vmatprep.subr.mxu1 %v484_v37 }
 0x163   :  { %817 = vmatpush3.msra.mxu1 %v484_v37 }
 0x164   :  { %818 = vmatprep.subr.mxu1 %v483_v38 }
 0x165   :  { %819 = vmatpush3.msra.mxu1 %v483_v38 }
 0x166   :  { %820 = vmatprep.subr.mxu1 %v482_v39 }
 0x167   :  { %821 = vmatpush3.msra.mxu1 %v482_v39 }
 0x168   :  { %822 = vmatprep.subr.mxu1 %v481_v40 }
 0x169   :  { %823 = vmatpush3.msra.mxu1 %v481_v40 }
 0x16a   :  { %824 = vmatprep.subr.mxu1 %v480_v41 }
 0x16b   :  { %825 = vmatpush3.msra.mxu1 %v480_v41 }
 0x16c   :  { %826 = vmatprep.subr.mxu1 %v479_v42 }
 0x16d   :  { %827 = vmatpush3.msra.mxu1 %v479_v42 }
 0x16e   :  { %828 = vmatprep.subr.mxu1 %v478_v43 }
 0x16f   :  { %829 = vmatpush3.msra.mxu1 %v478_v43 }
 0x210   :  { %v762_v24 = vpop.f32.mrf.mxu1 }
 0x211   :  { %v337_v25 = vadd.f32 %v762_v24, %v616_v23 }
 0x212   :  { %v331_v26 = vpop.f32.mrf.mxu1 }
 0x213   :  { %341 = vst [vmem:[#allocation11 + $0x8] sm:$0xff] %v337_v25  ;;  %v332_v27 = vadd.f32 %v616_v23, %v331_v26 }
 0x215   :  { %340 = vst [vmem:[#allocation11] sm:$0xff] %v332_v27  ;;  %795 = vmatprep.mubr.f32.mxu0 %v332_v27 }
 0x216   :  { %796 = vmatmul.mubr.f32.vlgmr.msra.gmra.mxu0 %v337_v25 }
 0x2d6   :  { %v797_v45 = vpop.f32.mrf.mxu0 }
 0x2d7   :  { %v437_v46 = vadd.f32 %v797_v45, %v617_v44 }
 0x2d8   :  { %v431_v47 = vpop.f32.mrf.mxu0 }
 0x2d9   :  { %v447_v48 = vand.u32 2147483647, %v437_v46  ;;  %v432_v49 = vadd.f32 %v617_v44, %v431_v47  ;;  %v441_v5 = vmax.f32 %v437_v46, 0.0  ;;  %vm443_vm6 = vcmp.ne.f32.partialorder %v437_v46, %v437_v46 }
 0x2db   :  { %v449_v50 = vsub.f32 0.0, %v447_v48  ;;  %v446_v51 = vand.u32 2147483647, %v432_v49  ;;  %v440_v10 = vmax.f32 %v432_v49, 0.0  ;;  %vm442_vm7 = vcmp.ne.f32.partialorder %v432_v49, %v432_v49 }
 0x2dd   :  { %v452_v52 = vmul.f32 1.442695, %v449_v50  ;;  %v448_v53 = vsub.f32 0.0, %v446_v51 }
 0x2df   :  { %850 = vpow2.f32 %v452_v52  ;;  %v450_v54 = vmul.f32 1.442695, %v448_v53 }
 0x2e1   :  { %852 = vpow2.f32 %v450_v54 }
 0x2ec   :  { %v851_v55 = vpop.eup %850 }
 0x2ed   :  { %v463_v56 = vadd.f32 1.0, %v851_v55  ;;  %v466_v59 = vmul.f32 -0.5, %v851_v55  ;;  %v469_v62 = vand.u32 2147483647, %v851_v55 }
 0x2ee   :  { %v853_v57 = vpop.eup %852 }
 0x2ef   :  { %854 = vlog2.f32 %v463_v56  ;;  %v454_v58 = vadd.f32 1.0, %v853_v57  ;;  %v457_v60 = vmul.f32 -0.5, %v853_v57  ;;  %v467_v61 = vadd.f32 1.0, %v466_v59 }
 0x2f0   :  { %v460_v1 = vand.u32 2147483647, %v853_v57  ;;  %vm470_vm4 = vcmp.lt.f32.partialorder %v469_v62, 0.0004427343 }
 0x2f1   :  { %856 = vlog2.f32 %v454_v58  ;;  %v458_v63 = vadd.f32 1.0, %v457_v60  ;;  %v468_v3 = vmul.f32 %v851_v55, %v467_v61 }
 0x2f2   :  { %vm461_vm5 = vcmp.lt.f32.partialorder %v460_v1, 0.0004427343 }
 0x2f3   :  { %v459_v8 = vmul.f32 %v853_v57, %v458_v63 }
 0x2fc   :  { %v855_v0 = vpop.eup %854 }
 0x2fd   :  { %v465_v2 = vmul.f32 0.6931472, %v855_v0 }
 0x2fe   :  { %v857_v4 = vpop.eup %856 }
 0x2ff   :  { %v471_v6 = vsel %vm470_vm4, %v468_v3, %v465_v2  ;;  %v456_v7 = vmul.f32 0.6931472, %v857_v4 }
 0x300   :  { %v473_v9 = vadd.f32 %v471_v6, %v441_v5 }
 0x301   :  { %v462_v11 = vsel %vm461_vm5, %v459_v8, %v456_v7 }
 0x302   :  { %v472_v12 = vadd.f32 %v462_v11, %v440_v10  ;;  %v475_v13 = vsel %vm443_vm6, %v437_v46, %v473_v9 }
 0x303   :  { %v619_v16 = vadd.f32 -0.6931472, %v475_v13 }
 0x304   :  { %v474_v14 = vsel %vm442_vm7, %v432_v49, %v472_v12 }
 0x305   :  { %v618_v15 = vadd.f32 -0.6931472, %v474_v14 }
 0x307   :  { %830 = vmatprep.mubr.f32.mxu1 %v618_v15 }
 0x308   :  { %831 = vmatmul.mubr.f32.vlgmr.msra.gmra.mxu1 %v619_v16 }
 0x309   :  { %969 = shalt.err (!%p966_p1)
}
 0x30a   :  { %589 = dma.vmem_to_hbm [thread:$0]  %s584_s21, 256, %s1135_s9, [#allocation4], %s1010_s18, %s1010_s18, %s1011_s19  }
 0x30b   :  { %v620_v17 = vld [vmem:[%s1134_s8] ss:$0 sm:$0xff]  ;;  %s1016_s27 = smov [#allocation12]  }
 0x30c   :  { %s595_s28 = sshll.u32 %s1016_s27, 4  ;;  %s596_s28 = int_to_ptr.vmem [resolvable:$true] %s595_s28 }
 0x30d   :  { %s978_s1 = scalar_lea.vmem %s596_s28, 256  ;;  %p983_p3 = scmp.lt.s32.totalorder %s596_s28, %s596_s28 }
 0x30e   :  { %p979_p2 = scmp.ne.s32.totalorder %s596_s28, %s978_s1  ;;  %p984_p4 = scmp.lt.s32.totalorder %s978_s1, %s978_s1 }
 0x310   :  { %p985_p5 = por %p984_p4, %p983_p3 }
 0x312   :  { %p986_p6 = pnand %p985_p5, %p979_p2 }
 0x3c8   :  { %v832_v18 = vpop.f32.mrf.mxu1 }
 0x3c9   :  { %v573_v19 = vadd.f32 %v832_v18, %v620_v17 }
 0x3ca   :  { %v567_v20 = vpop.f32.mrf.mxu1 }
 0x3cb   :  { %577 = vst [vmem:[#allocation12 + $0x8] sm:$0xff] %v573_v19  ;;  %v568_v21 = vadd.f32 %v620_v17, %v567_v20 }
 0x3cd   :  { %576 = vst [vmem:[#allocation12] sm:$0xff] %v568_v21 }
 0x3ce   :  { %989 = shalt.err (!%p986_p6)
}
 0x3cf   :  { %601 = dma.vmem_to_hbm [thread:$0]  %s596_s28, 256, %s1136_s10, [#allocation13], %s1010_s18, %s1010_s18, %s1011_s19  }
 0x3d0   :  { %1004 = dma.done.wait [#allocation4], 256  }
 0x3d1   :  { %1005 = vsyncadd [#allocation4], 4294967040 }
 0x3d2   :  { %1006 = dma.done.wait [#allocation13], 256  }
 0x3d3   :  { %1007 = vsyncadd [#allocation13], 4294967040 }
 0x3d4   :  { %608 = vsyncpa [#allocation3], 1 }
 0x3d5   :  { %609 = vsyncpa [#allocation6], 1 }
 0x3d6   :  { %610 = vsyncpa [#allocation9], 1 }
 0x3d7   :  { %611 = vsyncpa [#allocation4], 1 }
 0x3d8   :  { %612 = vsyncpa [#allocation13], 1 }

</bundles_post_ra>
